<compile_context>
chip_gen: v6e
topology: v6e:2x2x1
jax: 0.10.0
libtpu: 0.0.40
codegen_flags: <defaults>
</compile_context>

<pallas_src>
import jax
import jax.numpy as jnp
from jax.experimental import pallas as pl
from jax.experimental.pallas import tpu as pltpu

LANES = 128
FEATS = 4
PACK = LANES // FEATS          # 32 samples per 128-lane row
TB_MAX = 1024                  # packed rows per tile -> 1024*128*4B = 512 KiB/block


def _mlp_kernel(x_ref, w1_ref, b1_ref, w2_ref, b2_ref, out_ref):
    # x_ref:   (TB, 128)   lane-dense packed input (32 samples / row)
    # w1_ref:  (128, 128)  block-diagonal (32 copies of W1^T)
    # b1_ref:  (1, 128)    b1 tiled 32x
    # w2_ref:  (128, 128)  block-diagonal (32 copies of W2^T)
    # b2_ref:  (1, 128)    b2 tiled 32x
    # out_ref: (TB, 128)
    x = x_ref[...]
    h = jnp.dot(x, w1_ref[...], preferred_element_type=jnp.float32) + b1_ref[...]
    h = jnp.maximum(h, 0.0)
    y = jnp.dot(h, w2_ref[...], preferred_element_type=jnp.float32) + b2_ref[...]
    out_ref[...] = y.astype(out_ref.dtype)


def eng_network_forward(x, w1, b1, w2, b2):
    """x: (B, ...) with prod(...) == 4; w1/w2 in PyTorch (out, in) convention."""
    B = x.shape[0]
    x_flat = x.reshape(B, -1)                      # nn.Flatten()
    assert x_flat.shape[1] == FEATS, "eng_network expects 4 flattened features"

    # ---- lane-dense repacking (free reshapes in HBM; tiny one-time weight prep) ----
    rows = pl.cdiv(B, PACK)                        # packed rows needed
    tb = rows if rows <= TB_MAX else TB_MAX        # packed rows per tile
    num_tiles = pl.cdiv(rows, tb)
    rows_p = num_tiles * tb                        # padded packed-row count
    b_pad = rows_p * PACK                          # padded sample count

    x_pad = jnp.pad(x_flat.astype(jnp.float32), ((0, b_pad - B), (0, 0)))
    x_packed = x_pad.reshape(rows_p, LANES)

    eye = jnp.eye(PACK, dtype=jnp.float32)
    w1_big = jnp.kron(eye, w1.T.astype(jnp.float32))   # (128,128) block-diagonal
    w2_big = jnp.kron(eye, w2.T.astype(jnp.float32))
    b1_big = jnp.tile(b1.astype(jnp.float32), PACK).reshape(1, LANES)
    b2_big = jnp.tile(b2.astype(jnp.float32), PACK).reshape(1, LANES)

    out_packed = pl.pallas_call(
        _mlp_kernel,
        out_shape=jax.ShapeDtypeStruct((rows_p, LANES), x_flat.dtype),
        grid_spec=pl.GridSpec(
            grid=(num_tiles,),
            in_specs=[
                pl.BlockSpec((tb, LANES), lambda i: (i, 0)),        # x tile
                pl.BlockSpec((LANES, LANES), lambda i: (0, 0)),     # W1 (resident)
                pl.BlockSpec((1, LANES), lambda i: (0, 0)),         # b1 (resident)
                pl.BlockSpec((LANES, LANES), lambda i: (0, 0)),     # W2 (resident)
                pl.BlockSpec((1, LANES), lambda i: (0, 0)),         # b2 (resident)
            ],
            out_specs=pl.BlockSpec((tb, LANES), lambda i: (i, 0)),
        ),
        compiler_params=pltpu.CompilerParams(
            dimension_semantics=("parallel",),
        ),
    )(x_packed, w1_big, b1_big, w2_big, b2_big)

    # Unpack (rows_p, 128) -> (b_pad, 4), drop padded samples.
    return out_packed.reshape(b_pad, FEATS)[:B]


def _reference_forward(x, w1, b1, w2, b2):
    xf = x.reshape(x.shape[0], -1)
    h = jnp.maximum(xf @ w1.T + b1, 0.0)
    return h @ w2.T + b2


if __name__ == "__main__":
    key = jax.random.PRNGKey(0)
    k_x, k_w1, k_b1, k_w2, k_b2, k_x2 = jax.random.split(key, 6)

    # PyTorch Linear init convention: W is (out, in), U(-1/sqrt(fan_in), 1/sqrt(fan_in)).
    bound = 1.0 / jnp.sqrt(4.0)
    w1 = jax.random.uniform(k_w1, (4, 4), jnp.float32, -bound, bound)
    b1 = jax.random.uniform(k_b1, (4,), jnp.float32, -bound, bound)
    w2 = jax.random.uniform(k_w2, (4, 4), jnp.float32, -bound, bound)
    b2 = jax.random.uniform(k_b2, (4,), jnp.float32, -bound, bound)

    # Small case: (8, 2, 2) flattens to (8, 4); exercises single-tile path.
    x_small = jax.random.normal(k_x, (8, 2, 2), dtype=jnp.float32)
    out_small = jax.block_until_ready(eng_network_forward(x_small, w1, b1, w2, b2))
    ref_small = _reference_forward(x_small, w1, b1, w2, b2)
    assert out_small.shape == (8, 4)
    assert jnp.allclose(out_small, ref_small, atol=1e-4, rtol=1e-4), "small-batch mismatch"

    # Larger, non-multiple-of-32 batch: exercises padding + multi-tile pipelined grid.
    x_big = jax.random.normal(k_x2, (40000, 4), dtype=jnp.float32)
    out_big = jax.block_until_ready(eng_network_forward(x_big, w1, b1, w2, b2))
    ref_big = _reference_forward(x_big, w1, b1, w2, b2)
    assert out_big.shape == (40000, 4)
    assert jnp.allclose(out_big, ref_big, atol=1e-4, rtol=1e-4), "large-batch mismatch"

    print("KERNEL_OK")
</pallas_src>

<mosaic_0001>
module attributes {stable_mosaic.version = 11 : i64} {
  func.func @_mlp_kernel(%arg0: i32, %arg1: memref<1x128xf32, #tpu.memory_space<vmem>>, %arg2: memref<128x128xf32, #tpu.memory_space<vmem>>, %arg3: memref<1x128xf32, #tpu.memory_space<vmem>>, %arg4: memref<128x128xf32, #tpu.memory_space<vmem>>, %arg5: memref<1x128xf32, #tpu.memory_space<vmem>>, %arg6: memref<1x128xf32, #tpu.memory_space<vmem>>) attributes {dimension_semantics = [#tpu.dimension_semantics<parallel>], iteration_bounds = array<i64: 1>, scalar_prefetch = 0 : i64, scratch_operands = 0 : i64, tpu.core_type = #tpu.core_type<tc>, window_params = [{transform_indices = @transform_0, window_bounds = array<i64: 1, 128>}, {pipeline_mode = #tpu.pipeline_mode<synchronous>, transform_indices = @transform_1, window_bounds = array<i64: 128, 128>}, {pipeline_mode = #tpu.pipeline_mode<synchronous>, transform_indices = @transform_2, window_bounds = array<i64: 1, 128>}, {pipeline_mode = #tpu.pipeline_mode<synchronous>, transform_indices = @transform_3, window_bounds = array<i64: 128, 128>}, {pipeline_mode = #tpu.pipeline_mode<synchronous>, transform_indices = @transform_4, window_bounds = array<i64: 1, 128>}, {transform_indices = @transform_5, window_bounds = array<i64: 1, 128>}]} {
    %c0 = arith.constant 0 : index
    %c0_0 = arith.constant 0 : index
    %0 = vector.load %arg1[%c0, %c0_0] : memref<1x128xf32, #tpu.memory_space<vmem>>, vector<1x128xf32>
    %c0_1 = arith.constant 0 : index
    %c0_2 = arith.constant 0 : index
    %1 = vector.load %arg2[%c0_1, %c0_2] : memref<128x128xf32, #tpu.memory_space<vmem>>, vector<128x128xf32>
    %cst = arith.constant dense<0.000000e+00> : vector<1x128xf32>
    %2 = tpu.matmul %0, %1, %cst {dimension_numbers = #tpu.dot_dimension_numbers<[1], [0], [0], [1], [0, 0, 1, 1], [], []>} : vector<1x128xf32>, vector<128x128xf32>, vector<1x128xf32> -> vector<1x128xf32>
    %c0_3 = arith.constant 0 : index
    %c0_4 = arith.constant 0 : index
    %3 = vector.load %arg3[%c0_3, %c0_4] : memref<1x128xf32, #tpu.memory_space<vmem>>, vector<1x128xf32>
    %4 = arith.addf %2, %3 : vector<1x128xf32>
    %cst_5 = arith.constant 0.000000e+00 : f32
    %5 = vector.broadcast %cst_5 : f32 to vector<1x128xf32>
    %6 = arith.maximumf %4, %5 : vector<1x128xf32>
    %c0_6 = arith.constant 0 : index
    %c0_7 = arith.constant 0 : index
    %7 = vector.load %arg4[%c0_6, %c0_7] : memref<128x128xf32, #tpu.memory_space<vmem>>, vector<128x128xf32>
    %cst_8 = arith.constant dense<0.000000e+00> : vector<1x128xf32>
    %8 = tpu.matmul %6, %7, %cst_8 {dimension_numbers = #tpu.dot_dimension_numbers<[1], [0], [0], [1], [0, 0, 1, 1], [], []>} : vector<1x128xf32>, vector<128x128xf32>, vector<1x128xf32> -> vector<1x128xf32>
    %c0_9 = arith.constant 0 : index
    %c0_10 = arith.constant 0 : index
    %9 = vector.load %arg5[%c0_9, %c0_10] : memref<1x128xf32, #tpu.memory_space<vmem>>, vector<1x128xf32>
    %10 = arith.addf %8, %9 : vector<1x128xf32>
    %c0_11 = arith.constant 0 : index
    %c0_12 = arith.constant 0 : index
    %11 = vector.load %arg6[%c0_11, %c0_12] : memref<1x128xf32, #tpu.memory_space<vmem>>, vector<1x128xf32>
    tpu.vector_store %arg6[%c0_11, %c0_12], %10 {strides = array<i32>} : memref<1x128xf32, #tpu.memory_space<vmem>>, vector<1x128xf32>,
    return
  }
  func.func @transform_0(%arg0: i32) -> (i32, i32) {
    %c0_i32 = arith.constant 0 : i32
    %c0_i32_0 = arith.constant 0 : i32
    return %arg0, %c0_i32 : i32, i32
  }
  func.func @transform_1(%arg0: i32) -> (i32, i32) {
    %c0_i32 = arith.constant 0 : i32
    %c0_i32_0 = arith.constant 0 : i32
    %c0_i32_1 = arith.constant 0 : i32
    return %c0_i32, %c0_i32_0 : i32, i32
  }
  func.func @transform_2(%arg0: i32) -> (i32, i32) {
    %c0_i32 = arith.constant 0 : i32
    %c0_i32_0 = arith.constant 0 : i32
    %c0_i32_1 = arith.constant 0 : i32
    return %c0_i32, %c0_i32_0 : i32, i32
  }
  func.func @transform_3(%arg0: i32) -> (i32, i32) {
    %c0_i32 = arith.constant 0 : i32
    %c0_i32_0 = arith.constant 0 : i32
    %c0_i32_1 = arith.constant 0 : i32
    return %c0_i32, %c0_i32_0 : i32, i32
  }
  func.func @transform_4(%arg0: i32) -> (i32, i32) {
    %c0_i32 = arith.constant 0 : i32
    %c0_i32_0 = arith.constant 0 : i32
    %c0_i32_1 = arith.constant 0 : i32
    return %c0_i32, %c0_i32_0 : i32, i32
  }
  func.func @transform_5(%arg0: i32) -> (i32, i32) {
    %c0_i32 = arith.constant 0 : i32
    %c0_i32_0 = arith.constant 0 : i32
    return %arg0, %c0_i32 : i32, i32
  }
}

</mosaic_0001>

<bundles_post_ra>
// kernel: tpu_custom_call.1
= control target key start
LH: loop header
LB: loop body
LE: loop exit
PB: predicated region body
PF: predicated region fallthrough
CT: control target
= control target key end

     0   :  { %10 = vsyncpa [#allocation3], 0  ;;  %s541_s0 = inlined_call_operand.hbm [shape: f32[1,128], index: 0, kind: input, shape index: {}]   ;;  %s542_s1 = inlined_call_operand.hbm [shape: f32[128,128], index: 1, kind: input, shape index: {}]   ;;  %s543_s2 = inlined_call_operand.vmem [shape: f32[1,128], index: 2, kind: input, shape index: {}]   ;;  %s544_s3 = inlined_call_operand.hbm [shape: f32[128,128], index: 3, kind: input, shape index: {}]   ;;  %s545_s4 = inlined_call_operand.vmem [shape: f32[1,128], index: 4, kind: input, shape index: {}]   ;;  %s546_s5 = inlined_call_operand.hbm [shape: f32[1,128], index: 5, kind: output, shape index: {}]  }
   0x1   :  { %11 = vsyncpa [#allocation6], 0 }
   0x2   :  { %12 = vsyncpa [#allocation4], 0  ;;  %s451_s18 = smov [#allocation5]  }
   0x3   :  { %s28_s19 = sshll.u32 %s451_s18, 4  ;;  %s29_s19 = int_to_ptr.vmem [resolvable:$true] %s28_s19 }
   0x4   :  { %s373_s20 = scalar_lea.vmem %s29_s19, 2048  ;;  %p378_p1 = scmp.lt.s32.totalorder %s29_s19, %s29_s19 }
   0x5   :  { %p374_p0 = scmp.ne.s32.totalorder %s29_s19, %s373_s20  ;;  %p379_p2 = scmp.lt.s32.totalorder %s373_s20, %s373_s20 }
   0x7   :  { %p380_p3 = por %p379_p2, %p378_p1 }
   0x9   :  { %p381_p4 = pnand %p380_p3, %p374_p0 }
   0xb   :  { %384 = shalt.err (!%p381_p4)
}
   0xc   :  { %s452_s21 = smov 128   ;;  %s453_s22 = smov 8  }
   0xd   :  { %34 = dma.hbm_to_vmem [thread:$0]  %s542_s1, 2048, %s29_s19, [#allocation6], %s452_s21, %s452_s21, %s453_s22  }
   0xe   :  { %s454_s25 = smov [#allocation2]   ;;  %s455_s27 = smov [#allocation7]  }
   0xf   :  { %s19_s26 = sshll.u32 %s454_s25, 4  ;;  %s42_s28 = sshll.u32 %s455_s27, 4  ;;  %s20_s26 = int_to_ptr.vmem [resolvable:$true] %s19_s26  ;;  %s43_s28 = int_to_ptr.vmem [resolvable:$true] %s42_s28 }
  0x10   :  { %s393_s29 = scalar_lea.vmem %s20_s26, 16  ;;  %s397_s30 = scalar_lea.vmem %s20_s26, 32 }
  0x11   :  { %p394_p5 = scmp.ne.s32.totalorder %s20_s26, %s393_s29  ;;  %p398_p6 = scmp.lt.s32.totalorder %s20_s26, %s20_s26 }
  0x12   :  { %p399_p7 = scmp.lt.s32.totalorder %s397_s30, %s393_s29 }
  0x14   :  { %p400_p8 = por %p399_p7, %p398_p6 }
  0x16   :  { %p401_p9 = pnand %p400_p8, %p394_p5 }
  0x18   :  { %404 = shalt.err (!%p401_p9)
}
  0x19   :  { %22 = dma.hbm_to_vmem [thread:$0]  %s541_s0, 16, %s20_s26, [#allocation3]  }
  0x1a   :  { %s413_s8 = scalar_lea.vmem %s43_s28, 2048  ;;  %p418_p11 = scmp.lt.s32.totalorder %s43_s28, %s43_s28 }
  0x1b   :  { %p414_p10 = scmp.ne.s32.totalorder %s43_s28, %s413_s8  ;;  %p419_p12 = scmp.lt.s32.totalorder %s413_s8, %s413_s8 }
  0x1d   :  { %p420_p13 = por %p419_p12, %p418_p11 }
  0x1f   :  { %p421_p0 = pnand %p420_p13, %p414_p10 }
  0x21   :  { %424 = shalt.err (!%p421_p0)
}
  0x22   :  { %48 = dma.hbm_to_vmem [thread:$0]  %s544_s3, 2048, %s43_s28, [#allocation6], %s452_s21, %s452_s21, %s453_s22  }
  0x23   :  { %445 = dma.done.wait [#allocation3], 16  }
  0x24   :  { %446 = vsyncadd [#allocation3], 4294967280 }
  0x25   :  { %447 = dma.done.wait [#allocation6], 4096  }
  0x26   :  { %448 = vsyncadd [#allocation6], 4294963200  ;;  %v456_v0 = vmov 0.0   ;;  %vm457_vm0 = vmmov 0   ;;  %v76_v1 = vld [vmem:[#allocation5 + $0x78] sm:$0xff]  ;;  %v75_v2 = vld [vmem:[#allocation5 + $0x70] sm:$0xff] }
  0x27   :  { %287 = vmatprep.subr.mxu0 %v456_v0  ;;  %319 = vmatprep.mubr.msk.f32.mxu0 %vm457_vm0, %v456_v0  ;;  %v74_v3 = vld [vmem:[#allocation5 + $0x68] sm:$0xff]  ;;  %v73_v4 = vld [vmem:[#allocation5 + $0x60] sm:$0xff]  ;;  %v164_v5 = vld [vmem:[#allocation7 + $0x78] sm:$0xff]  ;;  %s458_s12 = smov [#allocation8]  }
  0x28   :  { %322 = vmatprep.subr.mxu1 %v456_v0  ;;  %354 = vmatprep.mubr.msk.f32.mxu1 %vm457_vm0, %v456_v0  ;;  %v72_v6 = vld [vmem:[#allocation5 + $0x58] sm:$0xff]  ;;  %v163_v7 = vld [vmem:[#allocation7 + $0x70] sm:$0xff]  ;;  %v162_v8 = vld [vmem:[#allocation7 + $0x68] sm:$0xff]  ;;  %s243_s13 = sshll.u32 %s458_s12, 4  ;;  %s244_s13 = int_to_ptr.vmem [resolvable:$true] %s243_s13 }
  0x29   :  { %288 = vmatpush3.msra.mxu0 %v76_v1  ;;  %323 = vmatpush3.msra.mxu1 %v164_v5  ;;  %v71_v9 = vld [vmem:[#allocation5 + $0x50] sm:$0xff]  ;;  %v161_v10 = vld [vmem:[#allocation7 + $0x60] sm:$0xff]  ;;  %v70_v11 = vld [vmem:[#allocation5 + $0x48] sm:$0xff]  ;;  %s425_s14 = scalar_lea.vmem %s244_s13, 16  ;;  %s429_s15 = scalar_lea.vmem %s244_s13, 32 }
  0x2a   :  { %289 = vmatprep.subr.mxu0 %v456_v0  ;;  %324 = vmatprep.subr.mxu1 %v456_v0  ;;  %v160_v12 = vld [vmem:[#allocation7 + $0x58] sm:$0xff]  ;;  %v69_v13 = vld [vmem:[#allocation5 + $0x40] sm:$0xff]  ;;  %v159_v14 = vld [vmem:[#allocation7 + $0x50] sm:$0xff]  ;;  %p426_p1 = scmp.ne.s32.totalorder %s244_s13, %s425_s14  ;;  %p430_p2 = scmp.lt.s32.totalorder %s244_s13, %s244_s13 }
  0x2b   :  { %290 = vmatpush3.msra.mxu0 %v75_v2  ;;  %325 = vmatpush3.msra.mxu1 %v163_v7  ;;  %v68_v15 = vld [vmem:[#allocation5 + $0x38] sm:$0xff]  ;;  %v158_v16 = vld [vmem:[#allocation7 + $0x48] sm:$0xff]  ;;  %v67_v17 = vld [vmem:[#allocation5 + $0x30] sm:$0xff]  ;;  %p431_p3 = scmp.lt.s32.totalorder %s429_s15, %s425_s14 }
  0x2c   :  { %291 = vmatprep.subr.mxu0 %v456_v0  ;;  %326 = vmatprep.subr.mxu1 %v456_v0  ;;  %v157_v18 = vld [vmem:[#allocation7 + $0x40] sm:$0xff]  ;;  %v66_v19 = vld [vmem:[#allocation5 + $0x28] sm:$0xff]  ;;  %v156_v20 = vld [vmem:[#allocation7 + $0x38] sm:$0xff] }
  0x2d   :  { %292 = vmatpush3.msra.mxu0 %v74_v3  ;;  %327 = vmatpush3.msra.mxu1 %v162_v8  ;;  %v65_v21 = vld [vmem:[#allocation5 + $0x20] sm:$0xff]  ;;  %v155_v22 = vld [vmem:[#allocation7 + $0x30] sm:$0xff]  ;;  %v64_v23 = vld [vmem:[#allocation5 + $0x18] sm:$0xff]  ;;  %p432_p4 = por %p431_p3, %p430_p2 }
  0x2e   :  { %293 = vmatprep.subr.mxu0 %v456_v0  ;;  %328 = vmatprep.subr.mxu1 %v456_v0  ;;  %v154_v24 = vld [vmem:[#allocation7 + $0x28] sm:$0xff]  ;;  %v63_v25 = vld [vmem:[#allocation5 + $0x10] sm:$0xff]  ;;  %v153_v26 = vld [vmem:[#allocation7 + $0x20] sm:$0xff] }
  0x2f   :  { %294 = vmatpush3.msra.mxu0 %v73_v4  ;;  %329 = vmatpush3.msra.mxu1 %v161_v10  ;;  %v62_v27 = vld [vmem:[#allocation5 + $0x8] sm:$0xff]  ;;  %v152_v28 = vld [vmem:[#allocation7 + $0x18] sm:$0xff]  ;;  %v61_v29 = vld [vmem:[#allocation5] sm:$0xff]  ;;  %p433_p5 = pnand %p432_p4, %p426_p1 }
  0x30   :  { %295 = vmatprep.subr.mxu0 %v456_v0  ;;  %330 = vmatprep.subr.mxu1 %v456_v0  ;;  %v60_v30 = vld [vmem:[#allocation2] sm:$0x1]  ;;  %v151_v31 = vld [vmem:[#allocation7 + $0x10] sm:$0xff]  ;;  %v150_v32 = vld [vmem:[#allocation7 + $0x8] sm:$0xff] }
  0x31   :  { %296 = vmatpush3.msra.mxu0 %v72_v6  ;;  %331 = vmatpush3.msra.mxu1 %v160_v12  ;;  %v149_v33 = vld [vmem:[#allocation7] sm:$0xff]  ;;  %v77_v34 = vld [vmem:[%s543_s2] sm:$0x1] }
  0x32   :  { %297 = vmatprep.subr.mxu0 %v456_v0  ;;  %332 = vmatprep.subr.mxu1 %v456_v0  ;;  %v165_v39 = vld [vmem:[%s545_s4] sm:$0x1] }
  0x33   :  { %298 = vmatpush3.msra.mxu0 %v71_v9  ;;  %333 = vmatpush3.msra.mxu1 %v159_v14 }
  0x34   :  { %299 = vmatprep.subr.mxu0 %v456_v0  ;;  %334 = vmatprep.subr.mxu1 %v456_v0 }
  0x35   :  { %300 = vmatpush3.msra.mxu0 %v70_v11  ;;  %335 = vmatpush3.msra.mxu1 %v158_v16 }
  0x36   :  { %301 = vmatprep.subr.mxu0 %v456_v0  ;;  %336 = vmatprep.subr.mxu1 %v456_v0 }
  0x37   :  { %302 = vmatpush3.msra.mxu0 %v69_v13  ;;  %337 = vmatpush3.msra.mxu1 %v157_v18 }
  0x38   :  { %303 = vmatprep.subr.mxu0 %v456_v0  ;;  %338 = vmatprep.subr.mxu1 %v456_v0 }
  0x39   :  { %304 = vmatpush3.msra.mxu0 %v68_v15  ;;  %339 = vmatpush3.msra.mxu1 %v156_v20 }
  0x3a   :  { %305 = vmatprep.subr.mxu0 %v456_v0  ;;  %340 = vmatprep.subr.mxu1 %v456_v0 }
  0x3b   :  { %306 = vmatpush3.msra.mxu0 %v67_v17  ;;  %341 = vmatpush3.msra.mxu1 %v155_v22 }
  0x3c   :  { %307 = vmatprep.subr.mxu0 %v456_v0  ;;  %342 = vmatprep.subr.mxu1 %v456_v0 }
  0x3d   :  { %308 = vmatpush3.msra.mxu0 %v66_v19  ;;  %343 = vmatpush3.msra.mxu1 %v154_v24 }
  0x3e   :  { %309 = vmatprep.subr.mxu0 %v456_v0  ;;  %344 = vmatprep.subr.mxu1 %v456_v0 }
  0x3f   :  { %310 = vmatpush3.msra.mxu0 %v65_v21  ;;  %345 = vmatpush3.msra.mxu1 %v153_v26 }
  0x40   :  { %311 = vmatprep.subr.mxu0 %v456_v0  ;;  %346 = vmatprep.subr.mxu1 %v456_v0 }
  0x41   :  { %312 = vmatpush3.msra.mxu0 %v64_v23  ;;  %347 = vmatpush3.msra.mxu1 %v152_v28 }
  0x42   :  { %313 = vmatprep.subr.mxu0 %v456_v0  ;;  %348 = vmatprep.subr.mxu1 %v456_v0 }
  0x43   :  { %314 = vmatpush3.msra.mxu0 %v63_v25  ;;  %349 = vmatpush3.msra.mxu1 %v151_v31 }
  0x44   :  { %315 = vmatprep.subr.mxu0 %v456_v0  ;;  %350 = vmatprep.subr.mxu1 %v456_v0 }
  0x45   :  { %316 = vmatpush3.msra.mxu0 %v62_v27  ;;  %351 = vmatpush3.msra.mxu1 %v150_v32 }
  0x46   :  { %317 = vmatprep.subr.mxu0 %v456_v0  ;;  %352 = vmatprep.subr.mxu1 %v456_v0 }
  0x47   :  { %318 = vmatpush3.msra.mxu0 %v61_v29  ;;  %353 = vmatpush3.msra.mxu1 %v149_v33 }
  0x48   :  { %320 = vmatmul.mubr.f32.vlgmr.msra.gmra.mxu0 %v60_v30 }
 0x108   :  { %v144_v35 = vpop.f32.mrf.mxu0 }
 0x109   :  { %v145_v36 = vadd.f32 %v144_v35, %v77_v34 }
 0x10a   :  { %v321_v37 = vpop.f32.mrf.mxu0 }
 0x10b   :  { %v148_v38 = vmax.f32 %v145_v36, 0.0 }
 0x10d   :  { %355 = vmatmul.mubr.f32.vlgmr.msra.gmra.mxu1 %v148_v38 }
 0x1cd   :  { %v232_v40 = vpop.f32.mrf.mxu1 }
 0x1ce   :  { %v233_v41 = vadd.f32 %v232_v40, %v165_v39 }
 0x1cf   :  { %v356_v42 = vpop.f32.mrf.mxu1 }
 0x1d0   :  { %236 = vst [vmem:[#allocation8] sm:$0x1] %v233_v41 }
 0x1d1   :  { %436 = shalt.err (!%p433_p5)
}
 0x1d2   :  { %246 = dma.vmem_to_hbm [thread:$0]  %s244_s13, 16, %s546_s5, [#allocation4]  }
 0x1d3   :  { %449 = dma.done.wait [#allocation4], 16  }
 0x1d4   :  { %450 = vsyncadd [#allocation4], 4294967280 }
 0x1d5   :  { %250 = vsyncpa [#allocation3], 1 }
 0x1d6   :  { %251 = vsyncpa [#allocation6], 1 }
 0x1d7   :  { %252 = vsyncpa [#allocation4], 1 }

</bundles_post_ra>
